<compile_context>
chip_gen: v5e
topology: v5e:2x2
jax: 0.10.0
libtpu: 0.0.40
codegen_flags: <defaults>
</compile_context>

<pallas_src>
import functools

import jax
import jax.numpy as jnp
from jax.experimental import pallas as pl
from jax.experimental.pallas import tpu as pltpu

_LANES = 128


def _round_up(x: int, m: int) -> int:
    return ((x + m - 1) // m) * m


def _accumulate(net_ref, gt_ref, num_acc, den_acc, *, tt, col_base, t_valid):
    """Add this tile's contribution to the lane-partial accumulators.

    col_base is the STATIC global column offset of this tile when padded
    columns may be present (ragged T); None means every column is valid.
    Only (TB, 128) intermediates are ever live (one column group at a time).
    """
    for j in range(tt // _LANES):
        lo = j * _LANES
        if col_base is not None and col_base + lo >= t_valid:
            # Fully padded column group: contributes nothing, skip it.
            continue
        # Upcast BEFORE adding the epsilon / taking the log (bf16-safe).
        n = net_ref[:, lo:lo + _LANES].astype(jnp.float32)
        g = gt_ref[:, lo:lo + _LANES].astype(jnp.float32)
        if col_base is not None and col_base + lo + _LANES > t_valid:
            # Boundary group: neutralize padded lanes (net -> 1.0 so log = 0,
            # gt -> 0.0 so sums are unchanged).  The predicate is a
            # trace-time-constant lane mask, so this costs two selects on
            # exactly one column group.
            lane = jax.lax.broadcasted_iota(jnp.int32, n.shape, 1)
            valid = lane < (t_valid - (col_base + lo))
            n = jnp.where(valid, n, 1.0)
            g = jnp.where(valid, g, 0.0)
        # Sign folded: accumulate +g*log(n+eps); negate once at finalize.
        num_acc[...] = num_acc[...] + g * jnp.log(n + 1e-8)
        den_acc[...] = den_acc[...] + g


def _tag_loss_kernel(net_ref, gt_ref, out_ref, num_acc, den_acc, *,
                     tt, t_valid, grid_t):
    # net_ref, gt_ref: (TB, TT) input tiles.  out_ref: (TB, 128) per-row loss
    # slab (broadcast over lanes).  num_acc/den_acc: (TB, 128) f32 lane-partial
    # accumulators, resident across the T (reduction) grid axis.
    k = pl.program_id(1)

    @pl.when(k == 0)
    def _():
        num_acc[...] = jnp.zeros_like(num_acc)
        den_acc[...] = jnp.zeros_like(den_acc)

    last_start = (grid_t - 1) * tt
    needs_mask = last_start + tt > t_valid          # static

    if not needs_mask:
        # T divides the tile width: one unmasked fast path for every block.
        _accumulate(net_ref, gt_ref, num_acc, den_acc,
                    tt=tt, col_base=None, t_valid=t_valid)
    elif grid_t == 1:
        # Single T block that is ragged: masked path unconditionally.
        _accumulate(net_ref, gt_ref, num_acc, den_acc,
                    tt=tt, col_base=0, t_valid=t_valid)
    else:
        # Only the last T block carries padded columns; all earlier blocks
        # take the unmasked fast path.
        is_last = k == grid_t - 1

        @pl.when(jnp.logical_not(is_last))
        def _():
            _accumulate(net_ref, gt_ref, num_acc, den_acc,
                        tt=tt, col_base=None, t_valid=t_valid)

        @pl.when(is_last)
        def _():
            _accumulate(net_ref, gt_ref, num_acc, den_acc,
                        tt=tt, col_base=last_start, t_valid=t_valid)

    @pl.when(k == grid_t - 1)
    def _():
        # One cross-lane (XLU) reduce per row and one divide, once per batch
        # tile; lane-dense (TB, 128) store (unmasked vst).
        num_row = jnp.sum(num_acc[...], axis=1, keepdims=True)     # (TB, 1)
        den_row = jnp.sum(den_acc[...], axis=1, keepdims=True)     # (TB, 1)
        # NOTE: matches PyTorch reference — an all-zero gts row yields NaN/Inf.
        loss_row = -(num_row / den_row)
        out_ref[...] = jnp.broadcast_to(loss_row, out_ref.shape)


def _tag_loss_xla(net_outs, gts):
    """Pure-XLA reference / small-problem fallback."""
    net = net_outs.astype(jnp.float32)
    gt = gts.astype(jnp.float32)
    ac = jnp.sum(-gt * jnp.log(net + 1e-8), axis=1) / jnp.sum(gt, axis=1)
    return jnp.mean(ac)


def tag_loss(net_outs: jax.Array, gts: jax.Array, *,
             tb_max: int = 128, tt_max: int = 4096,
             use_pallas: bool | None = None) -> jax.Array:
    """Pallas TPU implementation of TAGLoss.forward. Returns a scalar f32."""
    assert net_outs.shape == gts.shape and net_outs.ndim == 2
    B, T = net_outs.shape

    if use_pallas is None:
        # Tiny problems are dominated by per-grid-step overhead and the
        # write-amplified (b_out, 128) slab -> pure-XLA path is better.
        use_pallas = (T >= 512) and (B * T >= (1 << 18))
    if not use_pallas:
        return _tag_loss_xla(net_outs, gts)

    itemsize = jnp.dtype(net_outs.dtype).itemsize
    sub = max(8, 32 // itemsize)          # sublane multiple for this dtype

    # Pick tb from ceil(B/2) so grid_b >= 2 whenever B allows it (v7x has two
    # TensorCores sharing HBM; this kernel is HBM-bound).
    tb = min(_round_up(max(pl.cdiv(B, 2), 1), sub), tb_max)
    tt = min(_round_up(T, _LANES), tt_max)
    grid_b = pl.cdiv(B, tb)
    grid_t = pl.cdiv(T, tt)
    b_out = grid_b * tb                   # padded row count of the output slab

    kernel = functools.partial(
        _tag_loss_kernel, tt=tt, t_valid=T, grid_t=grid_t)

    # 2 inputs x 2 pipeline buffers + accumulators + resident output block.
    # (Fused column-group compute keeps compiler-internal scratch to a few
    # vregs, so this accounting is now close to the real footprint.)
    vmem_needed = (2 * 2 * tb * tt * itemsize
                   + 2 * tb * _LANES * 4          # num/den accumulators
                   + 2 * tb * _LANES * 4)         # output block (double-buf)
    vmem_limit = int(min(48 * 1024 * 1024,
                         max(2 * vmem_needed, 32 * 1024 * 1024)))

    cost = pl.CostEstimate(
        flops=4 * B * T,
        transcendentals=B * T,
        bytes_accessed=2 * B * T * itemsize + b_out * _LANES * 4,
    )

    per_row = pl.pallas_call(
        kernel,
        out_shape=jax.ShapeDtypeStruct((b_out, _LANES), jnp.float32),
        grid_spec=pltpu.PrefetchScalarGridSpec(
            num_scalar_prefetch=0,
            grid=(grid_b, grid_t),                      # reduction axis last
            in_specs=[
                pl.BlockSpec((tb, tt), lambda i, k: (i, k)),
                pl.BlockSpec((tb, tt), lambda i, k: (i, k)),
            ],
            out_specs=pl.BlockSpec((tb, _LANES), lambda i, k: (i, 0)),
            scratch_shapes=[
                pltpu.VMEM((tb, _LANES), jnp.float32),   # numerator partials
                pltpu.VMEM((tb, _LANES), jnp.float32),   # denominator partials
            ],
        ),
        compiler_params=pltpu.CompilerParams(
            dimension_semantics=("parallel", "arbitrary"),
            vmem_limit_bytes=vmem_limit,
        ),
        cost_estimate=cost,
    )(net_outs, gts)

    # Lane 0 of each valid row holds that row's loss; padded rows are dropped.
    # The final mean over batch is a tiny XLA op on B scalars.
    return jnp.mean(per_row[:B, 0])


if __name__ == "__main__":
    key = jax.random.PRNGKey(0)
    keys = jax.random.split(key, 8)

    def make_case(kn, kg, b, t, dtype=jnp.float32):
        net = jax.nn.softmax(
            jax.random.normal(kn, (b, t), dtype=jnp.float32), axis=1)
        gt = jax.random.uniform(
            kg, (b, t), dtype=jnp.float32, minval=0.1, maxval=1.0)
        return net.astype(dtype), gt.astype(dtype)

    # Case 1: primary small case (batch=2, seq=16); force the kernel path.
    net1, gt1 = make_case(keys[0], keys[1], 2, 16)
    loss1 = tag_loss(net1, gt1, use_pallas=True)
    jax.block_until_ready(loss1)
    ref1 = _tag_loss_xla(net1, gt1)
    assert jnp.allclose(loss1, ref1, rtol=1e-5, atol=1e-5), (loss1, ref1)

    # Case 2: unaligned T (single-block boundary-group masking), forced kernel.
    net2, gt2 = make_case(keys[2], keys[3], 4, 200)
    loss2 = tag_loss(net2, gt2, use_pallas=True)
    jax.block_until_ready(loss2)
    ref2 = _tag_loss_xla(net2, gt2)
    assert jnp.allclose(loss2, ref2, rtol=1e-5, atol=1e-5), (loss2, ref2)

    # Case 3: multi-block ragged T + grid_b = 2 (auto-selects the kernel).
    net3, gt3 = make_case(keys[4], keys[5], 64, 5000)
    loss3 = tag_loss(net3, gt3)
    jax.block_until_ready(loss3)
    ref3 = _tag_loss_xla(net3, gt3)
    assert jnp.allclose(loss3, ref3, rtol=1e-4, atol=1e-5), (loss3, ref3)

    # Case 4: bf16 inputs (in-kernel upcast before +eps / log), forced kernel.
    net4, gt4 = make_case(keys[6], keys[7], 16, 3000, dtype=jnp.bfloat16)
    loss4 = tag_loss(net4, gt4, use_pallas=True)
    jax.block_until_ready(loss4)
    ref4 = _tag_loss_xla(net4, gt4)
    assert jnp.allclose(loss4, ref4, rtol=1e-4, atol=1e-4), (loss4, ref4)

    # Case 5: tiny-problem auto path uses the pure-XLA fallback.
    loss5 = tag_loss(net1, gt1)
    jax.block_until_ready(loss5)
    assert jnp.allclose(loss5, ref1, rtol=1e-5, atol=1e-5), (loss5, ref1)

    print("KERNEL_OK")
</pallas_src>

<mosaic_0001>
module attributes {stable_mosaic.version = 11 : i64} {
  func.func @_tag_loss_kernel(%arg0: i32, %arg1: i32, %arg2: memref<8x128xf32, #tpu.memory_space<vmem>>, %arg3: memref<8x128xf32, #tpu.memory_space<vmem>>, %arg4: memref<8x128xf32, #tpu.memory_space<vmem>>, %arg5: memref<8x128xf32, #tpu.memory_space<vmem>>, %arg6: memref<8x128xf32, #tpu.memory_space<vmem>>) attributes {dimension_semantics = [#tpu.dimension_semantics<parallel>, #tpu.dimension_semantics<arbitrary>], iteration_bounds = array<i64: 1, 1>, scalar_prefetch = 0 : i64, scratch_operands = 2 : i64, tpu.core_type = #tpu.core_type<tc>, window_params = [{transform_indices = @transform_0, window_bounds = array<i64: 8, 128>}, {transform_indices = @transform_1, window_bounds = array<i64: 8, 128>}, {transform_indices = @transform_2, window_bounds = array<i64: 8, 128>}]} {
    %c0_i32 = arith.constant 0 : i32
    %0 = arith.cmpi eq, %arg1, %c0_i32 : i32
    %1 = arith.extui %0 : i1 to i32
    %c0_i32_0 = arith.constant 0 : i32
    %2 = arith.cmpi ne, %1, %c0_i32_0 : i32
    scf.if %2 {
      %cst_16 = arith.constant 0.000000e+00 : f32
      %25 = vector.broadcast %cst_16 : f32 to vector<8x128xf32>
      %c0_17 = arith.constant 0 : index
      %c0_18 = arith.constant 0 : index
      %26 = vector.load %arg5[%c0_17, %c0_18] : memref<8x128xf32, #tpu.memory_space<vmem>>, vector<8x128xf32>
      tpu.vector_store %arg5[%c0_17, %c0_18], %25 {strides = array<i32>} : memref<8x128xf32, #tpu.memory_space<vmem>>, vector<8x128xf32>,
      %cst_19 = arith.constant 0.000000e+00 : f32
      %27 = vector.broadcast %cst_19 : f32 to vector<8x128xf32>
      %c0_20 = arith.constant 0 : index
      %c0_21 = arith.constant 0 : index
      %28 = vector.load %arg6[%c0_20, %c0_21] : memref<8x128xf32, #tpu.memory_space<vmem>>, vector<8x128xf32>
      tpu.vector_store %arg6[%c0_20, %c0_21], %27 {strides = array<i32>} : memref<8x128xf32, #tpu.memory_space<vmem>>, vector<8x128xf32>,
    } else {
    }
    %c0 = arith.constant 0 : index
    %c0_1 = arith.constant 0 : index
    %3 = vector.load %arg2[%c0, %c0_1] : memref<8x128xf32, #tpu.memory_space<vmem>>, vector<8x128xf32>
    %c0_2 = arith.constant 0 : index
    %c0_3 = arith.constant 0 : index
    %4 = vector.load %arg3[%c0_2, %c0_3] : memref<8x128xf32, #tpu.memory_space<vmem>>, vector<8x128xf32>
    %5 = tpu.iota {dimensions = array<i32: 1>} : vector<8x128xi32>
    %c16_i32 = arith.constant 16 : i32
    %6 = vector.broadcast %c16_i32 : i32 to vector<8x128xi32>
    %7 = arith.cmpi slt, %5, %6 : vector<8x128xi32>
    %cst = arith.constant 1.000000e+00 : f32
    %8 = vector.broadcast %cst : f32 to vector<8x128xf32>
    %9 = arith.select %7, %3, %8 : vector<8x128xi1>, vector<8x128xf32>
    %cst_4 = arith.constant 0.000000e+00 : f32
    %10 = vector.broadcast %cst_4 : f32 to vector<8x128xf32>
    %11 = arith.select %7, %4, %10 : vector<8x128xi1>, vector<8x128xf32>
    %c0_5 = arith.constant 0 : index
    %c0_6 = arith.constant 0 : index
    %12 = vector.load %arg5[%c0_5, %c0_6] : memref<8x128xf32, #tpu.memory_space<vmem>>, vector<8x128xf32>
    %cst_7 = arith.constant 9.99999993E-9 : f32
    %13 = vector.broadcast %cst_7 : f32 to vector<8x128xf32>
    %14 = arith.addf %9, %13 : vector<8x128xf32>
    %15 = math.log %14 : vector<8x128xf32>
    %16 = arith.mulf %11, %15 : vector<8x128xf32>
    %17 = arith.addf %12, %16 : vector<8x128xf32>
    %c0_8 = arith.constant 0 : index
    %c0_9 = arith.constant 0 : index
    %18 = vector.load %arg5[%c0_8, %c0_9] : memref<8x128xf32, #tpu.memory_space<vmem>>, vector<8x128xf32>
    tpu.vector_store %arg5[%c0_8, %c0_9], %17 {strides = array<i32>} : memref<8x128xf32, #tpu.memory_space<vmem>>, vector<8x128xf32>,
    %c0_10 = arith.constant 0 : index
    %c0_11 = arith.constant 0 : index
    %19 = vector.load %arg6[%c0_10, %c0_11] : memref<8x128xf32, #tpu.memory_space<vmem>>, vector<8x128xf32>
    %20 = arith.addf %19, %11 : vector<8x128xf32>
    %c0_12 = arith.constant 0 : index
    %c0_13 = arith.constant 0 : index
    %21 = vector.load %arg6[%c0_12, %c0_13] : memref<8x128xf32, #tpu.memory_space<vmem>>, vector<8x128xf32>
    tpu.vector_store %arg6[%c0_12, %c0_13], %20 {strides = array<i32>} : memref<8x128xf32, #tpu.memory_space<vmem>>, vector<8x128xf32>,
    %c0_i32_14 = arith.constant 0 : i32
    %22 = arith.cmpi eq, %arg1, %c0_i32_14 : i32
    %23 = arith.extui %22 : i1 to i32
    %c0_i32_15 = arith.constant 0 : i32
    %24 = arith.cmpi ne, %23, %c0_i32_15 : i32
    scf.if %24 {
      %c0_16 = arith.constant 0 : index
      %c0_17 = arith.constant 0 : index
      %25 = vector.load %arg5[%c0_16, %c0_17] : memref<8x128xf32, #tpu.memory_space<vmem>>, vector<8x128xf32>
      %cst_18 = arith.constant dense<0.000000e+00> : vector<8xf32>
      %26 = vector.multi_reduction <add>, %25, %cst_18 [1] : vector<8x128xf32> to vector<8xf32>
      %27 = vector.shape_cast %26 : vector<8xf32> to vector<8x1xf32>
      %c0_19 = arith.constant 0 : index
      %c0_20 = arith.constant 0 : index
      %28 = vector.load %arg6[%c0_19, %c0_20] : memref<8x128xf32, #tpu.memory_space<vmem>>, vector<8x128xf32>
      %cst_21 = arith.constant dense<0.000000e+00> : vector<8xf32>
      %29 = vector.multi_reduction <add>, %28, %cst_21 [1] : vector<8x128xf32> to vector<8xf32>
      %30 = vector.shape_cast %29 : vector<8xf32> to vector<8x1xf32>
      %31 = arith.divf %27, %30 : vector<8x1xf32>
      %cst_22 = arith.constant 0.000000e+00 : f32
      %32 = vector.broadcast %cst_22 : f32 to vector<8x1xf32>
      %33 = arith.subf %32, %31 : vector<8x1xf32>
      %34 = vector.shape_cast %33 : vector<8x1xf32> to vector<8x1xf32>
      %35 = vector.broadcast %34 : vector<8x1xf32> to vector<8x128xf32>
      %c0_23 = arith.constant 0 : index
      %c0_24 = arith.constant 0 : index
      %36 = vector.load %arg4[%c0_23, %c0_24] : memref<8x128xf32, #tpu.memory_space<vmem>>, vector<8x128xf32>
      tpu.vector_store %arg4[%c0_23, %c0_24], %35 {strides = array<i32>} : memref<8x128xf32, #tpu.memory_space<vmem>>, vector<8x128xf32>,
    } else {
    }
    return
  }
  func.func @transform_0(%arg0: i32, %arg1: i32) -> (i32, i32) {
    %c0_i32 = arith.constant 0 : i32
    return %arg0, %arg1 : i32, i32
  }
  func.func @transform_1(%arg0: i32, %arg1: i32) -> (i32, i32) {
    %c0_i32 = arith.constant 0 : i32
    return %arg0, %arg1 : i32, i32
  }
  func.func @transform_2(%arg0: i32, %arg1: i32) -> (i32, i32) {
    %c0_i32 = arith.constant 0 : i32
    %c0_i32_0 = arith.constant 0 : i32
    return %arg0, %c0_i32 : i32, i32
  }
}

</mosaic_0001>

<bundles_post_ra>
// kernel: tpu_custom_call.1
= control target key start
LH: loop header
LB: loop body
LE: loop exit
PB: predicated region body
PF: predicated region fallthrough
CT: control target
= control target key end

     0   :  { %7 = vsyncpa [#allocation5], 0  ;;  %s227_s0 = inlined_call_operand.hbm [shape: f32[2,16], index: 0, kind: input, shape index: {}]   ;;  %s228_s1 = inlined_call_operand.hbm [shape: f32[2,16], index: 1, kind: input, shape index: {}]   ;;  %s229_s2 = inlined_call_operand.hbm [shape: f32[8,128], index: 2, kind: output, shape index: {}]  }
   0x1   :  { %8 = vsyncpa [#allocation8], 0 }
   0x2   :  { %9 = vsyncpa [#allocation6], 0 }
   0x3   :  { %13 = vsyncadd [#allocation5], 96  ;;  %s14_s11 = sshll.u32 %s227_s0, 4  ;;  %s198_s12 = smov [#allocation4]   ;;  %s15_s11 = int_to_ptr.hbm [resolvable:$true] %s14_s11 }
   0x4   :  { %s16_s13 = sshll.u32 %s198_s12, 4  ;;  %s199_s14 = smov 32   ;;  %s17_s13 = int_to_ptr.vmem [resolvable:$true] %s16_s13 }
   0x5   :  { %s200_s15 = smov 2  }
   0x6   :  { %22 = dma.hbm_to_vmem [thread:$0]  %s15_s11, 32, %s17_s13, [#allocation5], %s199_s14, %s199_s14, %s200_s15  }
   0x7   :  { %26 = vsyncadd [#allocation8], 96  ;;  %s27_s18 = sshll.u32 %s228_s1, 4  ;;  %s201_s19 = smov [#allocation7]   ;;  %s28_s18 = int_to_ptr.hbm [resolvable:$true] %s27_s18 }
   0x8   :  { %s29_s20 = sshll.u32 %s201_s19, 4  ;;  %s30_s20 = int_to_ptr.vmem [resolvable:$true] %s29_s20 }
   0x9   :  { %35 = dma.hbm_to_vmem [thread:$0]  %s28_s18, 32, %s30_s20, [#allocation8], %s199_s14, %s199_s14, %s200_s15  }
   0xa   :  { %192 = dma.done.wait [#allocation5], 128  }
   0xb   :  { %193 = vsyncadd [#allocation5], 4294967168 }
   0xc   :  { %194 = dma.done.wait [#allocation8], 128  }
   0xd   :  { %195 = vsyncadd [#allocation8], 4294967168  ;;  %v52_v0 = vlaneseq  ;;  %v51_v2 = vld [vmem:[#allocation7] sm:$0xff]  ;;  %v50_v3 = vld [vmem:[#allocation4] sm:$0xff]  ;;  %s202_s0 = smov [#allocation9]   ;;  %s100_s23 = sshll.u32 %s229_s2, 4  ;;  %s101_s23 = int_to_ptr.hbm [resolvable:$true] %s100_s23 }
   0xe   :  { %s98_s1 = sshll.u32 %s202_s0, 4  ;;  %s99_s1 = int_to_ptr.vmem [resolvable:$true] %s98_s1 }
   0xf   :  { %v53_v1 = vand.u32 127, %v52_v0 }
  0x11   :  { %vm54_vm0 = vcmp.lt.s32.totalorder %v53_v1, 16 }
  0x12   :  { %v56_v4 = vsel %vm54_vm0, %v51_v2, 0.0  ;;  %v55_v5 = vsel %vm54_vm0, %v50_v3, 1.0 }
  0x13   :  { %74 = vadd.xlane.f32.xlu0 %v56_v4  ;;  %v58_v6 = vadd.f32 1e-08, %v55_v5 }
  0x15   :  { %116 = vlog2.f32 %v58_v6 }
  0x1b   :  { %v117_v7 = vpop.eup %116 }
  0x1c   :  { %v60_v8 = vmul.f32 0.6931472, %v117_v7 }
  0x1e   :  { %v61_v9 = vmul.f32 %v60_v8, %v56_v4 }
  0x20   :  { %71 = vadd.xlane.f32.xlu0 %v61_v9 }
  0x86   :  { %v75_v10 = vpop.xlane.xlu0 %74 }
  0x87   :  { %118 = vrcp.f32 %v75_v10  ;;  %v87_v14 = vand.u32 2147483648, %v75_v10  ;;  %v85_v16 = vand.u32 2147483647, %v75_v10  ;;  %vm81_vm2 = vweird.f32 %v75_v10 }
  0x89   :  { %v88_v18 = vor.u32 1.1754944e-38, %v87_v14  ;;  %vm86_vm4 = vcmp.eq.f32.partialorder %v85_v16, 8.507059e+37 }
  0x8d   :  { %v119_v11 = vpop.eup %118 }
  0x8e   :  { %v77_v12 = vmul.f32 %v119_v11, %v75_v10  ;;  %vm82_vm1 = vweird.f32 %v119_v11 }
  0x8f   :  { %vm83_vm3 = vmor %vm81_vm2, %vm82_vm1 }
  0x90   :  { %v78_v13 = vsub.f32 1.0, %v77_v12 }
  0x92   :  { %v79_v15 = vmul.f32 %v119_v11, %v78_v13 }
  0x93   :  { %v72_v19 = vpop.xlane.xlu0 %71 }
  0x94   :  { %v80_v17 = vadd.f32 %v119_v11, %v79_v15 }
  0x96   :  { %v84_v20 = vsel %vm83_vm3, %v119_v11, %v80_v17 }
  0x97   :  { %v89_v21 = vsel %vm86_vm4, %v88_v18, %v84_v20 }
  0x98   :  { %v90_v22 = vmul.f32 %v89_v21, %v72_v19 }
  0x9a   :  { %v91_v23 = vsub.f32 0.0, %v90_v22 }
  0x9c   :  { %92 = vst [vmem:[#allocation9] sm:$0xff] %v91_v23 }
  0x9d   :  { %103 = dma.vmem_to_hbm [thread:$0]  %s99_s1, 128, %s101_s23, [#allocation6]  }
  0x9e   :  { %196 = dma.done.wait [#allocation6], 128  }
  0x9f   :  { %197 = vsyncadd [#allocation6], 4294967168 }
  0xa0   :  { %108 = vsyncpa [#allocation5], 1 }
  0xa1   :  { %109 = vsyncpa [#allocation8], 1 }
  0xa2   :  { %110 = vsyncpa [#allocation6], 1 }

</bundles_post_ra>
